<compile_context>
chip_gen: v6e
topology: v6e:2x2x1
jax: 0.10.0
libtpu: 0.0.40
codegen_flags: <defaults>
</compile_context>

<pallas_src>
import math

import jax
import jax.numpy as jnp
from jax.experimental import pallas as pl
from jax.experimental.pallas import tpu as pltpu

NUM_COLS = 7
NUM_ROWS = 6
S_SIZE = NUM_COLS * NUM_ROWS   # 42
A_SIZE = NUM_COLS              # 7
H_SIZE = 128

DEFAULT_BLOCK_B = 2048         # per-step VMEM (x double-buffered + weights +
                               # f32 intermediates) is a few MiB -> fits every
                               # scoped VMEM default (v5e/v6e/v7x)
TILE_B_ALIGN = 16              # batch-tile rounding (covers bf16 sublane packing)
MIN_SPLIT_TILE = 256           # only split for 2 TCs when each half has >=256 rows


def _round_up(x, m):
    return ((x + m - 1) // m) * m


def _policy_kernel(x_ref, w1_ref, b1_ref, w2_ref, b2_ref, w3_ref, b3_ref, out_ref):
    # One batch tile per grid step.  Weights/biases use constant index_maps so
    # they stay VMEM-resident across the whole grid; only x / out stream
    # HBM<->VMEM.
    mxu_dtype = w1_ref.dtype                 # bf16 (default) or f32
    x = x_ref[...].astype(mxu_dtype)         # no-op when dtypes already match

    h1 = jnp.dot(x, w1_ref[...], preferred_element_type=jnp.float32) + b1_ref[...]
    h1 = jnp.maximum(h1, 0.0)

    h2 = jnp.dot(h1.astype(mxu_dtype), w2_ref[...],
                 preferred_element_type=jnp.float32) + b2_ref[...]
    h2 = jnp.maximum(h2, 0.0)

    logits = jnp.dot(h2.astype(mxu_dtype), w3_ref[...],
                     preferred_element_type=jnp.float32) + b3_ref[...]

    # Numerically stable softmax along dim=1, all in f32.  Exact divide: the
    # epilogue is nowhere near the binding slot, and these probabilities feed
    # Categorical sampling / log_prob for REINFORCE gradients.
    m = jnp.max(logits, axis=1, keepdims=True)
    e = jnp.exp(logits - m)
    denom = jnp.sum(e, axis=1, keepdims=True)
    out_ref[...] = (e / denom).astype(out_ref.dtype)


def policy_forward(x, params, *, block_b=DEFAULT_BLOCK_B, use_bf16_mxu=True,
                   core_parallel=False):
    """x: (B, S_SIZE) float32 or bfloat16. Returns (B, A_SIZE) softmax probs (f32)."""
    w1, b1, w2, b2, w3, b3 = params
    B, s = x.shape
    assert s == S_SIZE

    if use_bf16_mxu:
        # Cast the (tiny, VMEM-resident) weights once at the call boundary.
        # Accumulation and all elementwise math stay f32 inside the kernel.
        w1, w2, w3 = (w.astype(jnp.bfloat16) for w in (w1, w2, w3))

    # Batch tile: aligned, capped at block_b.  For large batches cap the tile
    # so the grid has >= 2 steps (both v7x TensorCores get work).
    tb = min(block_b, _round_up(B, TILE_B_ALIGN))
    if B >= 2 * MIN_SPLIT_TILE:
        tb = min(tb, _round_up(pl.cdiv(B, 2), MIN_SPLIT_TILE))
    grid = (pl.cdiv(B, tb),)

    grid_spec = pltpu.PrefetchScalarGridSpec(
        num_scalar_prefetch=0,
        grid=grid,
        in_specs=[
            pl.BlockSpec((tb, S_SIZE), lambda i: (i, 0)),        # x: streamed per tile
            pl.BlockSpec((S_SIZE, H_SIZE), lambda i: (0, 0)),    # w1: resident
            pl.BlockSpec((1, H_SIZE), lambda i: (0, 0)),         # b1
            pl.BlockSpec((H_SIZE, H_SIZE), lambda i: (0, 0)),    # w2
            pl.BlockSpec((1, H_SIZE), lambda i: (0, 0)),         # b2
            pl.BlockSpec((H_SIZE, A_SIZE), lambda i: (0, 0)),    # w3
            pl.BlockSpec((1, A_SIZE), lambda i: (0, 0)),         # b3
        ],
        out_specs=pl.BlockSpec((tb, A_SIZE), lambda i: (i, 0)),
    )

    # "parallel" is the safe default everywhere; core_parallel=True requests an
    # explicit 2-TensorCore split of the batch axis on v7x.
    sem = pltpu.CORE_PARALLEL if core_parallel else "parallel"

    return pl.pallas_call(
        _policy_kernel,
        out_shape=jax.ShapeDtypeStruct((B, A_SIZE), jnp.float32),
        grid_spec=grid_spec,
        compiler_params=pltpu.CompilerParams(dimension_semantics=(sem,)),
    )(x, w1, b1, w2, b2, w3, b3)


def init_params(key):
    """PyTorch nn.Linear default init: U(-1/sqrt(fan_in), 1/sqrt(fan_in)).

    Weights stored transposed to (in, out) so the kernel computes x @ W + b
    (== PyTorch's x @ W.T + b).  No padding anywhere.
    """
    ks = jax.random.split(key, 6)

    def linear(kw, kb, fan_in, fan_out):
        bound = 1.0 / math.sqrt(fan_in)
        w = jax.random.uniform(kw, (fan_in, fan_out), jnp.float32, -bound, bound)
        b = jax.random.uniform(kb, (1, fan_out), jnp.float32, -bound, bound)
        return w, b

    w1, b1 = linear(ks[0], ks[1], S_SIZE, H_SIZE)
    w2, b2 = linear(ks[2], ks[3], H_SIZE, H_SIZE)
    w3, b3 = linear(ks[4], ks[5], H_SIZE, A_SIZE)
    return (w1, b1, w2, b2, w3, b3)


def policy_forward_ref(x, params, *, use_bf16_mxu=True):
    """Pure-JAX reference (PyTorch semantics; optionally matched bf16-MXU casts)."""
    w1, b1, w2, b2, w3, b3 = params
    cast = (lambda a: a.astype(jnp.bfloat16)) if use_bf16_mxu else (lambda a: a.astype(jnp.float32))
    h1 = jax.nn.relu(jnp.dot(cast(x), cast(w1), preferred_element_type=jnp.float32) + b1)
    h2 = jax.nn.relu(jnp.dot(cast(h1), cast(w2), preferred_element_type=jnp.float32) + b2)
    logits = jnp.dot(cast(h2), cast(w3), preferred_element_type=jnp.float32) + b3
    return jax.nn.softmax(logits, axis=1)


if __name__ == "__main__":
    key = jax.random.PRNGKey(0)
    pkey, xkey, xkey2 = jax.random.split(key, 3)
    params = init_params(pkey)

    # --- small batch (the act()/serving regime), single (partial) grid step ---
    x = jax.random.normal(xkey, (2, S_SIZE), jnp.float32)
    probs = jax.block_until_ready(policy_forward(x, params))
    ref = policy_forward_ref(x, params, use_bf16_mxu=True)
    assert probs.shape == (2, A_SIZE)
    assert jnp.allclose(jnp.sum(probs, axis=1), 1.0, atol=1e-4)       # exact divide
    assert jnp.allclose(probs, ref, atol=2e-3, rtol=2e-3)

    # --- multi-tile grid with a ragged batch (batched rollout states) ---
    xb = jax.random.normal(xkey2, (37, S_SIZE), jnp.float32)
    probs_b = jax.block_until_ready(policy_forward(xb, params, block_b=16))
    ref_b = policy_forward_ref(xb, params, use_bf16_mxu=True)
    assert probs_b.shape == (37, A_SIZE)
    assert jnp.allclose(jnp.sum(probs_b, axis=1), 1.0, atol=1e-4)
    assert jnp.allclose(probs_b, ref_b, atol=2e-3, rtol=2e-3)

    # --- exact f32-MXU path ---
    probs_f32 = jax.block_until_ready(
        policy_forward(xb, params, block_b=16, use_bf16_mxu=False))
    ref_f32 = policy_forward_ref(xb, params, use_bf16_mxu=False)
    assert jnp.allclose(probs_f32, ref_f32, atol=1e-5, rtol=1e-4)

    # --- bf16-streamed activations (halves the dominant HBM stream on v5e/v6e) ---
    probs_xbf16 = jax.block_until_ready(policy_forward(xb.astype(jnp.bfloat16), params))
    assert jnp.allclose(probs_xbf16, ref_b, atol=2e-3, rtol=2e-3)

    print("KERNEL_OK")
</pallas_src>

<mosaic_0001>
module attributes {stable_mosaic.version = 11 : i64} {
  func.func @_policy_kernel(%arg0: i32, %arg1: memref<16x42xf32, #tpu.memory_space<vmem>>, %arg2: memref<42x128xbf16, #tpu.memory_space<vmem>>, %arg3: memref<1x128xf32, #tpu.memory_space<vmem>>, %arg4: memref<128x128xbf16, #tpu.memory_space<vmem>>, %arg5: memref<1x128xf32, #tpu.memory_space<vmem>>, %arg6: memref<128x7xbf16, #tpu.memory_space<vmem>>, %arg7: memref<1x7xf32, #tpu.memory_space<vmem>>, %arg8: memref<16x7xf32, #tpu.memory_space<vmem>>) attributes {dimension_semantics = [#tpu.dimension_semantics<parallel>], iteration_bounds = array<i64: 1>, scalar_prefetch = 0 : i64, scratch_operands = 0 : i64, tpu.core_type = #tpu.core_type<tc>, window_params = [{transform_indices = @transform_0, window_bounds = array<i64: 16, 42>}, {pipeline_mode = #tpu.pipeline_mode<synchronous>, transform_indices = @transform_1, window_bounds = array<i64: 42, 128>}, {pipeline_mode = #tpu.pipeline_mode<synchronous>, transform_indices = @transform_2, window_bounds = array<i64: 1, 128>}, {pipeline_mode = #tpu.pipeline_mode<synchronous>, transform_indices = @transform_3, window_bounds = array<i64: 128, 128>}, {pipeline_mode = #tpu.pipeline_mode<synchronous>, transform_indices = @transform_4, window_bounds = array<i64: 1, 128>}, {pipeline_mode = #tpu.pipeline_mode<synchronous>, transform_indices = @transform_5, window_bounds = array<i64: 128, 7>}, {pipeline_mode = #tpu.pipeline_mode<synchronous>, transform_indices = @transform_6, window_bounds = array<i64: 1, 7>}, {transform_indices = @transform_7, window_bounds = array<i64: 16, 7>}]} {
    %c0 = arith.constant 0 : index
    %c0_0 = arith.constant 0 : index
    %0 = vector.load %arg1[%c0, %c0_0] : memref<16x42xf32, #tpu.memory_space<vmem>>, vector<16x42xf32>
    %1 = arith.truncf %0 : vector<16x42xf32> to vector<16x42xbf16>
    %c0_1 = arith.constant 0 : index
    %c0_2 = arith.constant 0 : index
    %2 = vector.load %arg2[%c0_1, %c0_2] : memref<42x128xbf16, #tpu.memory_space<vmem>>, vector<42x128xbf16>
    %cst = arith.constant dense<0.000000e+00> : vector<16x128xf32>
    %3 = tpu.matmul %1, %2, %cst {dimension_numbers = #tpu.dot_dimension_numbers<[1], [0], [0], [1], [0, 0, 1, 1], [], []>} : vector<16x42xbf16>, vector<42x128xbf16>, vector<16x128xf32> -> vector<16x128xf32>
    %c0_3 = arith.constant 0 : index
    %c0_4 = arith.constant 0 : index
    %4 = vector.load %arg3[%c0_3, %c0_4] : memref<1x128xf32, #tpu.memory_space<vmem>>, vector<1x128xf32>
    %5 = vector.broadcast %4 : vector<1x128xf32> to vector<16x128xf32>
    %6 = arith.addf %3, %5 : vector<16x128xf32>
    %cst_5 = arith.constant 0.000000e+00 : f32
    %7 = vector.broadcast %cst_5 : f32 to vector<16x128xf32>
    %8 = arith.maximumf %6, %7 : vector<16x128xf32>
    %9 = arith.truncf %8 : vector<16x128xf32> to vector<16x128xbf16>
    %c0_6 = arith.constant 0 : index
    %c0_7 = arith.constant 0 : index
    %10 = vector.load %arg4[%c0_6, %c0_7] : memref<128x128xbf16, #tpu.memory_space<vmem>>, vector<128x128xbf16>
    %cst_8 = arith.constant dense<0.000000e+00> : vector<16x128xf32>
    %11 = tpu.matmul %9, %10, %cst_8 {dimension_numbers = #tpu.dot_dimension_numbers<[1], [0], [0], [1], [0, 0, 1, 1], [], []>} : vector<16x128xbf16>, vector<128x128xbf16>, vector<16x128xf32> -> vector<16x128xf32>
    %c0_9 = arith.constant 0 : index
    %c0_10 = arith.constant 0 : index
    %12 = vector.load %arg5[%c0_9, %c0_10] : memref<1x128xf32, #tpu.memory_space<vmem>>, vector<1x128xf32>
    %13 = vector.broadcast %12 : vector<1x128xf32> to vector<16x128xf32>
    %14 = arith.addf %11, %13 : vector<16x128xf32>
    %cst_11 = arith.constant 0.000000e+00 : f32
    %15 = vector.broadcast %cst_11 : f32 to vector<16x128xf32>
    %16 = arith.maximumf %14, %15 : vector<16x128xf32>
    %17 = arith.truncf %16 : vector<16x128xf32> to vector<16x128xbf16>
    %c0_12 = arith.constant 0 : index
    %c0_13 = arith.constant 0 : index
    %18 = vector.load %arg6[%c0_12, %c0_13] : memref<128x7xbf16, #tpu.memory_space<vmem>>, vector<128x7xbf16>
    %cst_14 = arith.constant dense<0.000000e+00> : vector<16x7xf32>
    %19 = tpu.matmul %17, %18, %cst_14 {dimension_numbers = #tpu.dot_dimension_numbers<[1], [0], [0], [1], [0, 0, 1, 1], [], []>} : vector<16x128xbf16>, vector<128x7xbf16>, vector<16x7xf32> -> vector<16x7xf32>
    %c0_15 = arith.constant 0 : index
    %c0_16 = arith.constant 0 : index
    %20 = vector.load %arg7[%c0_15, %c0_16] : memref<1x7xf32, #tpu.memory_space<vmem>>, vector<1x7xf32>
    %21 = vector.broadcast %20 : vector<1x7xf32> to vector<16x7xf32>
    %22 = arith.addf %19, %21 : vector<16x7xf32>
    %cst_17 = arith.constant dense<0xFF800000> : vector<16xf32>
    %23 = vector.multi_reduction <maximumf>, %22, %cst_17 [1] : vector<16x7xf32> to vector<16xf32>
    %24 = vector.shape_cast %23 : vector<16xf32> to vector<16x1xf32>
    %25 = vector.broadcast %24 : vector<16x1xf32> to vector<16x7xf32>
    %26 = arith.subf %22, %25 : vector<16x7xf32>
    %27 = math.exp %26 : vector<16x7xf32>
    %cst_18 = arith.constant dense<0.000000e+00> : vector<16xf32>
    %28 = vector.multi_reduction <add>, %27, %cst_18 [1] : vector<16x7xf32> to vector<16xf32>
    %29 = vector.shape_cast %28 : vector<16xf32> to vector<16x1xf32>
    %30 = vector.broadcast %29 : vector<16x1xf32> to vector<16x7xf32>
    %31 = arith.divf %27, %30 : vector<16x7xf32>
    %c0_19 = arith.constant 0 : index
    %c0_20 = arith.constant 0 : index
    %32 = vector.load %arg8[%c0_19, %c0_20] : memref<16x7xf32, #tpu.memory_space<vmem>>, vector<16x7xf32>
    tpu.vector_store %arg8[%c0_19, %c0_20], %31 {strides = array<i32>} : memref<16x7xf32, #tpu.memory_space<vmem>>, vector<16x7xf32>,
    return
  }
  func.func @transform_0(%arg0: i32) -> (i32, i32) {
    %c0_i32 = arith.constant 0 : i32
    %c0_i32_0 = arith.constant 0 : i32
    return %arg0, %c0_i32 : i32, i32
  }
  func.func @transform_1(%arg0: i32) -> (i32, i32) {
    %c0_i32 = arith.constant 0 : i32
    %c0_i32_0 = arith.constant 0 : i32
    %c0_i32_1 = arith.constant 0 : i32
    return %c0_i32, %c0_i32_0 : i32, i32
  }
  func.func @transform_2(%arg0: i32) -> (i32, i32) {
    %c0_i32 = arith.constant 0 : i32
    %c0_i32_0 = arith.constant 0 : i32
    %c0_i32_1 = arith.constant 0 : i32
    return %c0_i32, %c0_i32_0 : i32, i32
  }
  func.func @transform_3(%arg0: i32) -> (i32, i32) {
    %c0_i32 = arith.constant 0 : i32
    %c0_i32_0 = arith.constant 0 : i32
    %c0_i32_1 = arith.constant 0 : i32
    return %c0_i32, %c0_i32_0 : i32, i32
  }
  func.func @transform_4(%arg0: i32) -> (i32, i32) {
    %c0_i32 = arith.constant 0 : i32
    %c0_i32_0 = arith.constant 0 : i32
    %c0_i32_1 = arith.constant 0 : i32
    return %c0_i32, %c0_i32_0 : i32, i32
  }
  func.func @transform_5(%arg0: i32) -> (i32, i32) {
    %c0_i32 = arith.constant 0 : i32
    %c0_i32_0 = arith.constant 0 : i32
    %c0_i32_1 = arith.constant 0 : i32
    return %c0_i32, %c0_i32_0 : i32, i32
  }
  func.func @transform_6(%arg0: i32) -> (i32, i32) {
    %c0_i32 = arith.constant 0 : i32
    %c0_i32_0 = arith.constant 0 : i32
    %c0_i32_1 = arith.constant 0 : i32
    return %c0_i32, %c0_i32_0 : i32, i32
  }
  func.func @transform_7(%arg0: i32) -> (i32, i32) {
    %c0_i32 = arith.constant 0 : i32
    %c0_i32_0 = arith.constant 0 : i32
    return %arg0, %c0_i32 : i32, i32
  }
}

</mosaic_0001>

<bundles_post_ra>
// kernel: tpu_custom_call.1
= control target key start
LH: loop header
LB: loop body
LE: loop exit
PB: predicated region body
PF: predicated region fallthrough
CT: control target
= control target key end

     0   :  { %12 = vsyncpa [#allocation3], 0  ;;  %s718_s0 = inlined_call_operand.vmem [shape: f32[2,42], index: 0, kind: input, shape index: {}]   ;;  %s719_s1 = inlined_call_operand.hbm [shape: bf16[42,128], index: 1, kind: input, shape index: {}]   ;;  %s720_s2 = inlined_call_operand.vmem [shape: f32[1,128], index: 2, kind: input, shape index: {}]   ;;  %s721_s3 = inlined_call_operand.vmem [shape: bf16[128,128], index: 3, kind: input, shape index: {}]   ;;  %s722_s4 = inlined_call_operand.vmem [shape: f32[1,128], index: 4, kind: input, shape index: {}]   ;;  %s723_s5 = inlined_call_operand.vmem [shape: bf16[128,7], index: 5, kind: input, shape index: {}]   ;;  %s724_s6 = inlined_call_operand.vmem [shape: f32[1,7], index: 6, kind: input, shape index: {}]   ;;  %s725_s7 = inlined_call_operand.hbm [shape: f32[2,7], index: 7, kind: output, shape index: {}]  }
   0x1   :  { %13 = vsyncpa [#allocation4], 0  ;;  %s570_s24 = smov [#allocation2]  }
   0x2   :  { %s21_s25 = sshll.u32 %s570_s24, 4  ;;  %s22_s25 = int_to_ptr.vmem [resolvable:$true] %s21_s25 }
   0x3   :  { %s534_s26 = scalar_lea.vmem %s22_s25, 384  ;;  %p539_p1 = scmp.lt.s32.totalorder %s22_s25, %s22_s25 }
   0x4   :  { %p535_p0 = scmp.ne.s32.totalorder %s22_s25, %s534_s26  ;;  %p540_p2 = scmp.lt.s32.totalorder %s534_s26, %s534_s26 }
   0x6   :  { %p541_p3 = por %p540_p2, %p539_p1 }
   0x8   :  { %p542_p4 = pnand %p541_p3, %p535_p0 }
   0xa   :  { %545 = shalt.err (!%p542_p4)
}
   0xb   :  { %s571_s27 = smov 64   ;;  %s572_s28 = smov 4  }
   0xc   :  { %27 = dma.hbm_to_vmem [thread:$0]  %s719_s1, 384, %s22_s25, [#allocation3], %s571_s27, %s571_s27, %s572_s28  }
   0xd   :  { %566 = dma.done.wait [#allocation3], 384  }
   0xe   :  { %567 = vsyncadd [#allocation3], 4294966912  ;;  %v573_v0 = vmov 0.0   ;;  %vm574_vm0 = vmmov 0   ;;  %vm79_vm1 = vcmask 1044480   ;;  %v500_v3 = vld [vmem:[#allocation2 + $0x8] sm:$0xff]  }
   0xf   :  { %441 = vmatprep.subr.bf16.mxu0 %v573_v0  ;;  %447 = vmatprep.mubr.msk.bf16.mxu0 %vm574_vm0, %v573_v0  ;;  %v499_v1 = vld [vmem:[#allocation2 + $0x10] sm:$0x1f]   ;;  %v502_v4 = vld [vmem:[%s721_s3 + $0x38] sm:$0xff]   ;;  %v501_v5 = vld [vmem:[#allocation2] sm:$0xff]   ;;  %vm75_vm2 = vcmask 343040   ;;  %vm354_vm3 = vcmask 56320  }
  0x10   :  { %451 = vmatprep.subr.bf16.mxu1 %v573_v0  ;;  %467 = vmatprep.mubr.msk.bf16.mxu1 %vm574_vm0, %v573_v0  ;;  %v81_v2 = vsel %vm79_vm1, %v499_v1, 0  ;;  %v42_v6 = vld [vmem:[%s718_s0] sm:$0xff]  ;;  %v503_v7 = vld [vmem:[%s721_s3 + $0x30] sm:$0xff]   ;;  %v43_v8 = vld [vmem:[%s718_s0 + $0x8] sm:$0xff] }
  0x11   :  { %442 = vmatpush3.bf16.msra.mxu0 %v81_v2  ;;  %452 = vmatpush3.bf16.msra.mxu1 %v502_v4  ;;  %v504_v9 = vld [vmem:[%s721_s3 + $0x28] sm:$0xff]   ;;  %v44_v10 = vpack.c.bf16 %v43_v8, %v42_v6  ;;  %v505_v11 = vld [vmem:[%s721_s3 + $0x20] sm:$0xff]   ;;  %v506_v12 = vld [vmem:[%s721_s3 + $0x18] sm:$0xff]  }
  0x12   :  { %443 = vmatprep.subr.bf16.mxu0 %v573_v0  ;;  %453 = vmatprep.subr.bf16.mxu1 %v573_v0  ;;  %v507_v13 = vld [vmem:[%s721_s3 + $0x10] sm:$0xff]   ;;  %v508_v14 = vld [vmem:[%s721_s3 + $0x8] sm:$0xff]   ;;  %v509_v15 = vld [vmem:[%s721_s3] sm:$0xff]  }
  0x13   :  { %v510_v16 = vld [vmem:[%s723_s5 + $0x38] sm:$0xff]   ;;  %v511_v17 = vld [vmem:[%s723_s5 + $0x30] sm:$0xff]   ;;  %v512_v18 = vld [vmem:[%s723_s5 + $0x28] sm:$0xff]  }
  0x14   :  { %v513_v19 = vld [vmem:[%s723_s5 + $0x20] sm:$0xff]   ;;  %v514_v20 = vld [vmem:[%s723_s5 + $0x18] sm:$0xff]   ;;  %v515_v31 = vld [vmem:[%s723_s5 + $0x10] sm:$0xff]  }
  0x15   :  { %444 = vmatpush3.bf16.msra.mxu0 %v500_v3  ;;  %454 = vmatpush3.bf16.msra.mxu1 %v503_v7  ;;  %v396_v21 = vld [vmem:[%s720_s2] ss:$0 sm:$0xff]  ;;  %v516_v32 = vld [vmem:[%s723_s5 + $0x8] sm:$0xff]  }
  0x16   :  { %445 = vmatprep.subr.bf16.mxu0 %v573_v0  ;;  %455 = vmatprep.subr.bf16.mxu1 %v573_v0  ;;  %v517_v33 = vld [vmem:[%s723_s5] sm:$0xff]  }
  0x17   :  { %v401_v34 = vld [vmem:[%s722_s4] ss:$0 sm:$0xff] }
  0x18   :  { %v410_v44 = vld [vmem:[%s724_s6] ss:$0 sm:$0xff] }
  0x19   :  { %446 = vmatpush3.bf16.msra.mxu0 %v501_v5  ;;  %456 = vmatpush3.bf16.msra.mxu1 %v504_v9 }
  0x1a   :  { %471 = vmatprep.subr.bf16.mxu0 %v573_v0  ;;  %457 = vmatprep.subr.bf16.mxu1 %v573_v0 }
  0x1c   :  { %448 = vmatmul.mubr.msk.bf16.vlgmr.msra.gmra.mxu0 %vm75_vm2, %v44_v10 }
  0x1d   :  { %487 = vmatprep.mubr.msk.bf16.mxu0 %vm574_vm0, %v573_v0  ;;  %458 = vmatpush3.bf16.msra.mxu1 %v505_v11 }
  0x1e   :  { %459 = vmatprep.subr.bf16.mxu1 %v573_v0  ;;  %472 = vmatpush3.bf16.msra.mxu0 %v510_v16 }
  0x1f   :  { %473 = vmatprep.subr.bf16.mxu0 %v573_v0 }
  0x21   :  { %460 = vmatpush3.bf16.msra.mxu1 %v506_v12 }
  0x22   :  { %461 = vmatprep.subr.bf16.mxu1 %v573_v0  ;;  %474 = vmatpush3.bf16.msra.mxu0 %v511_v17 }
  0x23   :  { %475 = vmatprep.subr.bf16.mxu0 %v573_v0 }
  0x25   :  { %462 = vmatpush3.bf16.msra.mxu1 %v507_v13 }
  0x26   :  { %463 = vmatprep.subr.bf16.mxu1 %v573_v0  ;;  %476 = vmatpush3.bf16.msra.mxu0 %v512_v18 }
  0x27   :  { %477 = vmatprep.subr.bf16.mxu0 %v573_v0 }
  0x29   :  { %464 = vmatpush3.bf16.msra.mxu1 %v508_v14 }
  0x2a   :  { %465 = vmatprep.subr.bf16.mxu1 %v573_v0  ;;  %478 = vmatpush3.bf16.msra.mxu0 %v513_v19 }
  0x2b   :  { %479 = vmatprep.subr.bf16.mxu0 %v573_v0 }
  0x2d   :  { %466 = vmatpush3.bf16.msra.mxu1 %v509_v15 }
  0x2e   :  { %480 = vmatpush3.bf16.msra.mxu0 %v514_v20 }
  0x2f   :  { %481 = vmatprep.subr.bf16.mxu0 %v573_v0 }
  0x32   :  { %482 = vmatpush3.bf16.msra.mxu0 %v515_v31 }
  0x33   :  { %483 = vmatprep.subr.bf16.mxu0 %v573_v0 }
  0x36   :  { %484 = vmatpush3.bf16.msra.mxu0 %v516_v32 }
  0x37   :  { %485 = vmatprep.subr.bf16.mxu0 %v573_v0 }
  0x3a   :  { %486 = vmatpush3.bf16.msra.mxu0 %v517_v33 }
  0xdc   :  { %v117_v22 = vpop.f32.mrf.mxu0 }
  0xdd   :  { %v118_v24 = vadd.f32 %v396_v21, %v117_v22 }
  0xde   :  { %v449_v23 = vpop.f32.mrf.mxu0 }
  0xdf   :  { %v124_v28 = vmax.f32 %v118_v24, 0.0 }
  0xe0   :  { %v120_v25 = vpop.f32.mrf.mxu0 }
  0xe1   :  { %v121_v26 = vadd.f32 %v396_v21, %v120_v25 }
  0xe2   :  { %v450_v27 = vpop.f32.mrf.mxu0 }
  0xe3   :  { %v125_v29 = vmax.f32 %v121_v26, 0.0 }
  0xe5   :  { %v126_v30 = vpack.c.bf16 %v125_v29, %v124_v28 }
  0xe7   :  { %468 = vmatmul.mubr.bf16.vlgmr.msra.gmra.mxu1 %v126_v30 }
 0x1a7   :  { %v232_v35 = vpop.f32.mrf.mxu1 }
 0x1a8   :  { %v233_v37 = vadd.f32 %v401_v34, %v232_v35 }
 0x1a9   :  { %v469_v36 = vpop.f32.mrf.mxu1 }
 0x1aa   :  { %v239_v41 = vmax.f32 %v233_v37, 0.0 }
 0x1ab   :  { %v235_v38 = vpop.f32.mrf.mxu1 }
 0x1ac   :  { %v236_v39 = vadd.f32 %v401_v34, %v235_v38 }
 0x1ad   :  { %v470_v40 = vpop.f32.mrf.mxu1 }
 0x1ae   :  { %v240_v42 = vmax.f32 %v236_v39, 0.0 }
 0x1b0   :  { %v241_v43 = vpack.c.bf16 %v240_v42, %v239_v41 }
 0x1b2   :  { %488 = vmatmul.mubr.bf16.vlgmr.msra.gmra.mxu0 %v241_v43 }
 0x272   :  { %v347_v45 = vpop.f32.mrf.mxu0 }
 0x273   :  { %v348_v46 = vadd.f32 %v410_v44, %v347_v45 }
 0x274   :  { %v489_v47 = vpop.f32.mrf.mxu0 }
 0x275   :  { %v355_v48 = vsel %vm354_vm3, %v348_v46, -inf }
 0x276   :  { %356 = vmax.xlane.f32.xlu0 %v355_v48  ;;  %v350_v49 = vpop.f32.mrf.mxu0 }
 0x277   :  { %v351_v50 = vadd.f32 %v410_v44, %v350_v49 }
 0x278   :  { %v490_v51 = vpop.f32.mrf.mxu0 }
 0x279   :  { %v358_v52 = vsel %vm354_vm3, %v351_v50, -inf }
 0x27a   :  { %359 = vmax.xlane.f32.xlu0 %v358_v52 }
 0x2ff   :  { %v357_v53 = vpop.xlane.xlu0 %356 }
 0x300   :  { %v361_v54 = vsub.f32 %v348_v46, %v357_v53 }
 0x302   :  { %v363_v55 = vmul.f32 1.442695, %v361_v54 }
 0x303   :  { %v360_v56 = vpop.xlane.xlu0 %359 }
 0x304   :  { %518 = vpow2.f32 %v363_v55  ;;  %v362_v57 = vsub.f32 %v351_v50, %v360_v56 }
 0x306   :  { %v365_v58 = vmul.f32 1.442695, %v362_v57 }
 0x308   :  { %520 = vpow2.f32 %v365_v58 }
 0x311   :  { %v519_v59 = vpop.eup %518 }
 0x312   :  { %v367_v60 = vsel %vm354_vm3, %v519_v59, 0.0 }
 0x313   :  { %368 = vadd.xlane.f32.xlu1 %v367_v60 }
 0x315   :  { %v521_v61 = vpop.eup %520 }
 0x316   :  { %v370_v62 = vsel %vm354_vm3, %v521_v61, 0.0 }
 0x317   :  { %371 = vadd.xlane.f32.xlu1 %v370_v62 }
 0x39c   :  { %v369_v63 = vpop.xlane.xlu1 %368 }
 0x39d   :  { %522 = vrcp.f32 %v369_v63 }
 0x3a0   :  { %v372_v0 = vpop.xlane.xlu1 %371 }
 0x3a1   :  { %524 = vrcp.f32 %v372_v0 }
 0x3aa   :  { %v523_v1 = vpop.eup %522 }
 0x3ab   :  { %v374_v2 = vmul.f32 %v523_v1, %v519_v59 }
 0x3ad   :  { %377 = vst.msk [vmem:[#allocation5] sm:$0xff] %vm354_vm3, %v374_v2 }
 0x3ae   :  { %v525_v3 = vpop.eup %524 }
 0x3af   :  { %v376_v4 = vmul.f32 %v525_v3, %v521_v61 }
 0x3b1   :  { %378 = vst.msk [vmem:[#allocation5 + $0x8] sm:$0xff] %vm354_vm3, %v376_v4 }
 0x3b2   :  { %383 = vsyncadd [#allocation4], 224  ;;  %s575_s4 = smov [#allocation5]  }
 0x3b3   :  { %s384_s5 = sshll.u32 %s575_s4, 4  ;;  %s385_s5 = int_to_ptr.vmem [resolvable:$true] %s384_s5 }
 0x3b4   :  { %s546_s6 = scalar_lea.vmem %s385_s5, 32  ;;  %s550_s21 = scalar_lea.vmem %s385_s5, 256 }
 0x3b5   :  { %p547_p5 = scmp.ne.s32.totalorder %s385_s5, %s546_s6  ;;  %p551_p6 = scmp.lt.s32.totalorder %s385_s5, %s385_s5 }
 0x3b6   :  { %p552_p7 = scmp.lt.s32.totalorder %s550_s21, %s546_s6 }
 0x3b8   :  { %p553_p8 = por %p552_p7, %p551_p6 }
 0x3ba   :  { %p554_p9 = pnand %p553_p8, %p547_p5 }
 0x3bc   :  { %557 = shalt.err (!%p554_p9)
}
 0x3bd   :  { %s576_s22 = smov 32   ;;  %s577_s23 = smov 2  }
 0x3be   :  { %390 = dma.vmem_to_hbm [thread:$0]  %s385_s5, 32, %s725_s7, [#allocation4], %s576_s22, %s576_s22, %s577_s23  }
 0x3bf   :  { %568 = dma.done.wait [#allocation4], 256  }
 0x3c0   :  { %569 = vsyncadd [#allocation4], 4294967040 }
 0x3c1   :  { %394 = vsyncpa [#allocation3], 1 }
 0x3c2   :  { %395 = vsyncpa [#allocation4], 1 }

</bundles_post_ra>
